<compile_context>
chip_gen: v7x
topology: tpu7x:2x2x1
jax: 0.10.0
libtpu: 0.0.40
codegen_flags: <defaults>
</compile_context>

<pallas_src>
import math
import functools

import jax
import jax.numpy as jnp
from jax.experimental import pallas as pl
from jax.experimental.pallas import tpu as pltpu

EPS = 1e-5
NEG_SLOPE = 0.1
LANE = 128                            # pad channel dim to a multiple of this
TM_MAX = 512                          # row tile (85%+ of HBM roofline, fits v7x VMEM)
VMEM_LIMIT_BYTES = 48 * 1024 * 1024   # < 64 MiB (v7x physical), << 128 MiB (v5e/v6e)


def _round_up(x, m):
    return (x + m - 1) // m * m


def _pick_tm(m_rows):
    # at least 2 row tiles so dimension_semantics=("parallel",) gives both
    # v7x TensorCores work; multiple of 16 for bf16 sublane packing.
    half = _round_up(max(pl.cdiv(m_rows, 2), 16), 16)
    return min(TM_MAX, half)


# ----------------------------------------------------------------------------
# Pallas kernels
# ----------------------------------------------------------------------------
def _store_and_stats(y, o_ref, stats_ref, tm, m_valid):
    """Write y (f32) as the (bf16) output tile and emit per-tile BN partial
    (sum, sum_sq) computed from the exact f32 accumulator."""
    o_ref[...] = y.astype(o_ref.dtype)
    if m_valid % tm != 0:                      # mask ragged rows out of the stats
        i = pl.program_id(0)
        row = i * tm + jax.lax.broadcasted_iota(jnp.int32, (tm, 1), 0)
        y = jnp.where(row < m_valid, y, 0.0)
    s = jnp.sum(y, axis=0, keepdims=True)                  # (1, Cp)
    sq = jnp.sum(y * y, axis=0, keepdims=True)             # (1, Cp)
    sel = jax.lax.broadcasted_iota(jnp.int32, (2, s.shape[1]), 0)
    stats_ref[...] = jnp.where(sel == 0, s, sq)[None]      # (1, 2, Cp)


def _mm_bn_stats_kernel(a_ref, b_ref, bias_ref, o_ref, stats_ref, *, tm, m_valid):
    """conv-as-matmul:  y = A @ B + bias  (bf16 operands, f32 accum) + BN stats."""
    y = jnp.dot(a_ref[...], b_ref[...], preferred_element_type=jnp.float32)
    y = y + bias_ref[...]
    _store_and_stats(y, o_ref, stats_ref, tm, m_valid)


def _act_mm_bn_stats_kernel(a_ref, b_ref, bias_ref, sc_ref, sh_ref,
                            o_ref, stats_ref, *, tm, m_valid):
    """Same as above, but the previous layer's bn1-affine + leaky_relu is fused
    onto the A tile before the dot (scale/shift replicated per 3x3 tap)."""
    a = a_ref[...].astype(jnp.float32) * sc_ref[...] + sh_ref[...]
    a = jnp.where(a >= 0, a, NEG_SLOPE * a).astype(b_ref.dtype)
    y = jnp.dot(a, b_ref[...], preferred_element_type=jnp.float32)
    y = y + bias_ref[...]
    _store_and_stats(y, o_ref, stats_ref, tm, m_valid)


def _bn_add_lrelu_kernel(y_ref, xs_ref, scale_ref, shift_ref, o_ref):
    # identity skip: leaky_relu( BN(y) + x ) — pure VPU, no MXU involved.
    z = y_ref[...].astype(jnp.float32) * scale_ref[...] + shift_ref[...] + xs_ref[...]
    o_ref[...] = jnp.where(z >= 0, z, NEG_SLOPE * z)


def _bn_proj_add_lrelu_kernel(y_ref, xs_ref, w_ref, b_ref, scale_ref, shift_ref, o_ref):
    # projection skip: leaky_relu( BN(y) + (xs @ W + b) )
    yn = y_ref[...].astype(jnp.float32) * scale_ref[...] + shift_ref[...]
    res = jnp.dot(xs_ref[...], w_ref[...], preferred_element_type=jnp.float32) + b_ref[...]
    z = yn + res
    o_ref[...] = jnp.where(z >= 0, z, NEG_SLOPE * z)


# ----------------------------------------------------------------------------
# Pallas wrappers
# ----------------------------------------------------------------------------
def _matmul_bn_stats(a, w_mat, bias, m_valid, *, in_scale=None, in_shift=None):
    """Row-tiled conv matmul with a single resident K tile (weights DMA'd once)
    and fused BN partial statistics.  Optionally fuses the previous layer's
    BN-affine + leaky_relu onto the A tiles (in_scale / in_shift, width K)."""
    m, kp = a.shape
    cp = w_mat.shape[1]
    tm = _pick_tm(m)
    m_tiles = pl.cdiv(m, tm)

    if in_scale is not None:
        kernel = functools.partial(_act_mm_bn_stats_kernel, tm=tm, m_valid=m_valid)
        extra_inputs = (in_scale, in_shift)
        extra_specs = [pl.BlockSpec((1, kp), lambda i: (0, 0)),
                       pl.BlockSpec((1, kp), lambda i: (0, 0))]
    else:
        kernel = functools.partial(_mm_bn_stats_kernel, tm=tm, m_valid=m_valid)
        extra_inputs = ()
        extra_specs = []

    y, stats = pl.pallas_call(
        kernel,
        out_shape=(
            jax.ShapeDtypeStruct((m, cp), jnp.bfloat16),
            jax.ShapeDtypeStruct((m_tiles, 2, cp), jnp.float32),
        ),
        grid=(m_tiles,),
        in_specs=[
            pl.BlockSpec((tm, kp), lambda i: (i, 0)),
            pl.BlockSpec((kp, cp), lambda i: (0, 0)),   # constant index -> resident, loaded once
            pl.BlockSpec((1, cp), lambda i: (0, 0)),
        ] + extra_specs,
        out_specs=(
            pl.BlockSpec((tm, cp), lambda i: (i, 0)),
            pl.BlockSpec((1, 2, cp), lambda i: (i, 0, 0)),
        ),
        compiler_params=pltpu.CompilerParams(
            dimension_semantics=("parallel",),
            vmem_limit_bytes=VMEM_LIMIT_BYTES,
        ),
    )(a, w_mat, bias, *extra_inputs)
    return y, stats


def _bn_add_lrelu(y, xs, scale, shift):
    """Identity-skip epilogue: BN(y) + xs, leaky_relu.  Pure VPU add."""
    m, cp = y.shape
    tm = _pick_tm(m)
    return pl.pallas_call(
        _bn_add_lrelu_kernel,
        out_shape=jax.ShapeDtypeStruct((m, cp), jnp.float32),
        grid=(pl.cdiv(m, tm),),
        in_specs=[
            pl.BlockSpec((tm, cp), lambda i: (i, 0)),
            pl.BlockSpec((tm, cp), lambda i: (i, 0)),
            pl.BlockSpec((1, cp), lambda i: (0, 0)),
            pl.BlockSpec((1, cp), lambda i: (0, 0)),
        ],
        out_specs=pl.BlockSpec((tm, cp), lambda i: (i, 0)),
        compiler_params=pltpu.CompilerParams(
            dimension_semantics=("parallel",),
            vmem_limit_bytes=VMEM_LIMIT_BYTES,
        ),
    )(y, xs, scale, shift)


def _bn_proj_add_lrelu(y, xs, w_skip, b_skip, scale, shift):
    """Projection-skip epilogue: BN(y) + (xs @ W + b), leaky_relu."""
    m, cp = y.shape
    cin = xs.shape[1]
    tm = _pick_tm(m)
    return pl.pallas_call(
        _bn_proj_add_lrelu_kernel,
        out_shape=jax.ShapeDtypeStruct((m, cp), jnp.float32),
        grid=(pl.cdiv(m, tm),),
        in_specs=[
            pl.BlockSpec((tm, cp), lambda i: (i, 0)),
            pl.BlockSpec((tm, cin), lambda i: (i, 0)),
            pl.BlockSpec((cin, cp), lambda i: (0, 0)),   # tiny, resident
            pl.BlockSpec((1, cp), lambda i: (0, 0)),
            pl.BlockSpec((1, cp), lambda i: (0, 0)),
            pl.BlockSpec((1, cp), lambda i: (0, 0)),
        ],
        out_specs=pl.BlockSpec((tm, cp), lambda i: (i, 0)),
        compiler_params=pltpu.CompilerParams(
            dimension_semantics=("parallel",),
            vmem_limit_bytes=VMEM_LIMIT_BYTES,
        ),
    )(y, xs, w_skip, b_skip, scale, shift)


# ----------------------------------------------------------------------------
# Layout plumbing (im2col, weight matrices, BN finalize) — plain JAX/XLA.
# ----------------------------------------------------------------------------
def _im2col_3x3(img, stride, pad_value=None):
    """im2col for a 3x3 conv with padding 1.  pad_value is an optional
    per-channel border fill (used to keep zero-padding semantics when the
    BN-affine + lrelu of the previous layer is fused into the next matmul)."""
    n, h, w, c = img.shape
    ho = (h + 2 - 3) // stride + 1
    wo = (w + 2 - 3) // stride + 1
    if pad_value is None:
        xp = jnp.pad(img, ((0, 0), (1, 1), (1, 1), (0, 0)))
    else:
        xp = jnp.broadcast_to(pad_value.astype(img.dtype).reshape(1, 1, 1, c),
                              (n, h + 2, w + 2, c))
        xp = xp.at[:, 1:h + 1, 1:w + 1, :].set(img)
    patches = []
    for ky in range(3):
        for kx in range(3):
            patches.append(jax.lax.slice(
                xp,
                (0, ky, kx, 0),
                (n, ky + stride * (ho - 1) + 1, kx + stride * (wo - 1) + 1, c),
                (1, stride, stride, 1)))
    cols = jnp.concatenate(patches, axis=-1).reshape(n * ho * wo, 9 * c)
    kp = _round_up(9 * c, 8)
    if kp != 9 * c:
        cols = jnp.pad(cols, ((0, 0), (0, kp - 9 * c)))
    return cols, (n, ho, wo)


def _conv_weight_matrix(w_oihw, kp, cp):
    """(Cout, Cin, 3, 3) -> bf16 (kp, cp) matrix in (ky, kx, cin) row order."""
    cout, cin, kh, kw = w_oihw.shape
    k_true = kh * kw * cin
    wm = jnp.transpose(w_oihw, (2, 3, 1, 0)).reshape(k_true, cout)
    wm = jnp.pad(wm, ((0, kp - k_true), (0, cp - cout)))
    return wm.astype(jnp.bfloat16)


def _pad_bias(b, cp):
    return jnp.pad(b, (0, cp - b.shape[0])).reshape(1, cp).astype(jnp.float32)


def _tile_per_tap(vec_1c, kp):
    """(1, C) per-channel vector -> (1, kp) replicated over the 9 taps in the
    same (tap, channel) order as the im2col columns; padded columns are 0."""
    tiled = jnp.tile(vec_1c, (1, 9))
    return jnp.pad(tiled, ((0, 0), (0, kp - tiled.shape[1]))).astype(jnp.float32)


def _bn_affine(stats, m_valid, gamma, beta, cp):
    """Finalize training-mode BatchNorm (biased var, eps=1e-5) from per-tile
    partial sums and fold the affine:  bn(y) = y*scale + shift."""
    tot = jnp.sum(stats, axis=0)                                  # (2, cp)
    mean = tot[0] / m_valid
    var = jnp.maximum(tot[1] / m_valid - mean * mean, 0.0)
    istd = jax.lax.rsqrt(var + EPS)
    c = gamma.shape[0]
    g = jnp.pad(gamma, (0, cp - c), constant_values=1.0)
    b = jnp.pad(beta, (0, cp - c))
    scale = g * istd
    shift = b - mean * scale
    return (scale.reshape(1, cp).astype(jnp.float32),
            shift.reshape(1, cp).astype(jnp.float32))


# ----------------------------------------------------------------------------
# Parameter init (deterministic, mirrors module __init__ shapes)
# ----------------------------------------------------------------------------
def init_params(key, cin, cout, use_1conv):
    def kaiming(k, shape, a):
        fan_in = shape[1] * shape[2] * shape[3]
        gain = math.sqrt(2.0 / (1.0 + a * a))
        std = gain / math.sqrt(fan_in)
        return std * jax.random.normal(k, shape, dtype=jnp.float32)

    k1, k2, k3 = jax.random.split(key, 3)
    p = {
        "w1": kaiming(k1, (cout, cin, 3, 3), 0.1),
        "b1": jnp.full((cout,), 0.01, jnp.float32),
        "w2": kaiming(k2, (cout, cout, 3, 3), 0.1),
        "b2": jnp.full((cout,), 0.01, jnp.float32),
        "gamma1": jnp.ones((cout,), jnp.float32),
        "beta1": jnp.zeros((cout,), jnp.float32),
        "gamma2": jnp.ones((cout,), jnp.float32),
        "beta2": jnp.zeros((cout,), jnp.float32),
    }
    if use_1conv:
        p["w3"] = kaiming(k3, (cout, cin, 1, 1), 0.0)   # kaiming_normal_ default a=0
        p["b3"] = jnp.full((cout,), 0.01, jnp.float32)
    return p


# ----------------------------------------------------------------------------
# Forward pass (NCHW in / NCHW out, PyTorch training-mode semantics)
# ----------------------------------------------------------------------------
def _residual_forward_impl(x_nchw, params, *, stride, use_1conv):
    x = jnp.transpose(x_nchw, (0, 2, 3, 1)).astype(jnp.float32)   # NCHW -> NHWC
    n, h, w, cin = x.shape
    cout = params["w1"].shape[0]
    cp = _round_up(cout, LANE)

    if not use_1conv and (stride != 1 or cin != cout):
        raise ValueError("identity skip requires stride == 1 and Cin == Cout")

    # --- conv1 (bf16 im2col matmul) + fused bn1 partial statistics ------------
    a1, (n, ho, wo) = _im2col_3x3(x.astype(jnp.bfloat16), stride)
    m = n * ho * wo
    k1p = a1.shape[1]
    w1_mat = _conv_weight_matrix(params["w1"], k1p, cp)
    b1 = _pad_bias(params["b1"], cp)
    y1, stats1 = _matmul_bn_stats(a1, w1_mat, b1, m)            # y1: bf16 (m, cp), raw (pre-BN)
    scale1, shift1 = _bn_affine(stats1, m, params["gamma1"], params["beta1"], cp)

    # --- conv2 with bn1-affine + leaky_relu fused onto its A tiles ------------
    # Slice off lane-padded channels only when Cout < 128 (trace-time branch;
    # real ResNet layers have Cout % 128 == 0, so no copy and no K blow-up).
    y1_c = y1 if cout == cp else y1[:, :cout]
    sc_c = scale1[:, :cout]
    sh_c = shift1[:, :cout]
    # Border pad value p solves p*scale + shift == 0 so lrelu(bn(p)) == 0,
    # matching the reference which zero-pads the *activated* feature map.
    # (Degenerate gamma == 0 channels would make this inexact; guarded.)
    pad_val = jnp.where(sc_c[0] != 0.0, -sh_c[0] / sc_c[0], 0.0)
    y1_img = y1_c.reshape(n, ho, wo, cout)
    a2, _ = _im2col_3x3(y1_img, 1, pad_value=pad_val)
    k2p = a2.shape[1]
    sc_k = _tile_per_tap(sc_c, k2p)
    sh_k = _tile_per_tap(sh_c, k2p)
    w2_mat = _conv_weight_matrix(params["w2"], k2p, cp)
    b2 = _pad_bias(params["b2"], cp)
    y2, stats2 = _matmul_bn_stats(a2, w2_mat, b2, m, in_scale=sc_k, in_shift=sh_k)
    scale2, shift2 = _bn_affine(stats2, m, params["gamma2"], params["beta2"], cp)

    # --- skip branch + bn2 + residual add + leaky_relu epilogue ---------------
    xs = x[:, ::stride, ::stride, :].reshape(m, cin)
    if use_1conv:
        w_skip = jnp.pad(params["w3"][:, :, 0, 0].T,
                         ((0, 0), (0, cp - cout))).astype(jnp.bfloat16)
        b_skip = _pad_bias(params["b3"], cp)
        out = _bn_proj_add_lrelu(y2, xs.astype(jnp.bfloat16), w_skip, b_skip,
                                 scale2, shift2)
    else:
        xs_p = jnp.pad(xs, ((0, 0), (0, cp - cin)))             # lane-dense, f32
        out = _bn_add_lrelu(y2, xs_p, scale2, shift2)

    out = out[:, :cout].reshape(n, ho, wo, cout)
    return jnp.transpose(out, (0, 3, 1, 2))                     # NHWC -> NCHW


residual_forward = jax.jit(_residual_forward_impl, static_argnames=("stride", "use_1conv"))


# ----------------------------------------------------------------------------
# Pure-JAX f32 reference (for sanity check)
# ----------------------------------------------------------------------------
def _ref_forward(x_nchw, params, *, stride, use_1conv):
    x = jnp.transpose(x_nchw, (0, 2, 3, 1)).astype(jnp.float32)

    def conv(xx, w, b, s, pad):
        w_hwio = jnp.transpose(w, (2, 3, 1, 0))
        y = jax.lax.conv_general_dilated(
            xx, w_hwio, (s, s), pad, dimension_numbers=("NHWC", "HWIO", "NHWC"))
        return y + b

    def bn(y, g, bta):
        mu = y.mean(axis=(0, 1, 2))
        v = y.var(axis=(0, 1, 2))
        return (y - mu) * jax.lax.rsqrt(v + EPS) * g + bta

    def lrelu(y):
        return jnp.where(y >= 0, y, NEG_SLOPE * y)

    y = lrelu(bn(conv(x, params["w1"], params["b1"], stride, [(1, 1), (1, 1)]),
                 params["gamma1"], params["beta1"]))
    y = bn(conv(y, params["w2"], params["b2"], 1, [(1, 1), (1, 1)]),
           params["gamma2"], params["beta2"])
    if use_1conv:
        x = conv(x, params["w3"], params["b3"], stride, [(0, 0), (0, 0)])
    out = lrelu(y + x)
    return jnp.transpose(out, (0, 3, 1, 2))


# ----------------------------------------------------------------------------
if __name__ == "__main__":
    key = jax.random.PRNGKey(0)
    kx, kp1, kp2 = jax.random.split(key, 3)

    N, Cin, Cout, H, W = 2, 4, 8, 16, 16
    x = jax.random.normal(kx, (N, Cin, H, W), dtype=jnp.float32)

    # Config A: projection skip, stride 2 (downsampling block)
    params_a = init_params(kp1, Cin, Cout, use_1conv=True)
    out_a = jax.block_until_ready(residual_forward(x, params_a, stride=2, use_1conv=True))
    ref_a = _ref_forward(x, params_a, stride=2, use_1conv=True)
    assert out_a.shape == (N, Cout, H // 2, W // 2)
    # bf16 MXU operands -> loosened tolerance vs the f32 reference
    assert jnp.allclose(out_a, ref_a, atol=0.1, rtol=0.05), \
        float(jnp.max(jnp.abs(out_a - ref_a)))
    assert float(jnp.mean(jnp.abs(out_a - ref_a))) < 3e-2

    # Config B: identity skip, stride 1
    params_b = init_params(kp2, Cin, Cin, use_1conv=False)
    out_b = jax.block_until_ready(residual_forward(x, params_b, stride=1, use_1conv=False))
    ref_b = _ref_forward(x, params_b, stride=1, use_1conv=False)
    assert out_b.shape == (N, Cin, H, W)
    assert jnp.allclose(out_b, ref_b, atol=0.1, rtol=0.05), \
        float(jnp.max(jnp.abs(out_b - ref_b)))
    assert float(jnp.mean(jnp.abs(out_b - ref_b))) < 3e-2

    print("KERNEL_OK")
</pallas_src>

<mosaic_0001>
module attributes {stable_mosaic.version = 11 : i64} {
  func.func @_mm_bn_stats_kernel(%arg0: i32, %arg1: memref<64x40xbf16, #tpu.memory_space<vmem>>, %arg2: memref<40x128xbf16, #tpu.memory_space<vmem>>, %arg3: memref<1x128xf32, #tpu.memory_space<vmem>>, %arg4: memref<64x128xbf16, #tpu.memory_space<vmem>>, %arg5: memref<1x2x128xf32, #tpu.memory_space<vmem>>) attributes {dimension_semantics = [#tpu.dimension_semantics<parallel>], iteration_bounds = array<i64: 2>, scalar_prefetch = 0 : i64, scratch_operands = 0 : i64, tpu.core_type = #tpu.core_type<tc>, window_params = [{transform_indices = @transform_0, window_bounds = array<i64: 64, 40>}, {pipeline_mode = #tpu.pipeline_mode<synchronous>, transform_indices = @transform_1, window_bounds = array<i64: 40, 128>}, {pipeline_mode = #tpu.pipeline_mode<synchronous>, transform_indices = @transform_2, window_bounds = array<i64: 1, 128>}, {transform_indices = @transform_3, window_bounds = array<i64: 64, 128>}, {transform_indices = @transform_4, window_bounds = array<i64: 1, 2, 128>}]} {
    %c0 = arith.constant 0 : index
    %c0_0 = arith.constant 0 : index
    %0 = vector.load %arg1[%c0, %c0_0] : memref<64x40xbf16, #tpu.memory_space<vmem>>, vector<64x40xbf16>
    %c0_1 = arith.constant 0 : index
    %c0_2 = arith.constant 0 : index
    %1 = vector.load %arg2[%c0_1, %c0_2] : memref<40x128xbf16, #tpu.memory_space<vmem>>, vector<40x128xbf16>
    %cst = arith.constant dense<0.000000e+00> : vector<64x128xf32>
    %2 = tpu.matmul %0, %1, %cst {dimension_numbers = #tpu.dot_dimension_numbers<[1], [0], [0], [1], [0, 0, 1, 1], [], []>} : vector<64x40xbf16>, vector<40x128xbf16>, vector<64x128xf32> -> vector<64x128xf32>
    %c0_3 = arith.constant 0 : index
    %c0_4 = arith.constant 0 : index
    %3 = vector.load %arg3[%c0_3, %c0_4] : memref<1x128xf32, #tpu.memory_space<vmem>>, vector<1x128xf32>
    %4 = vector.broadcast %3 : vector<1x128xf32> to vector<64x128xf32>
    %5 = arith.addf %2, %4 : vector<64x128xf32>
    %6 = arith.truncf %5 : vector<64x128xf32> to vector<64x128xbf16>
    %c0_5 = arith.constant 0 : index
    %c0_6 = arith.constant 0 : index
    %7 = vector.load %arg4[%c0_5, %c0_6] : memref<64x128xbf16, #tpu.memory_space<vmem>>, vector<64x128xbf16>
    tpu.vector_store %arg4[%c0_5, %c0_6], %6 {strides = array<i32>} : memref<64x128xbf16, #tpu.memory_space<vmem>>, vector<64x128xbf16>,
    %cst_7 = arith.constant dense<0.000000e+00> : vector<128xf32>
    %8 = vector.multi_reduction <add>, %5, %cst_7 [0] : vector<64x128xf32> to vector<128xf32>
    %9 = vector.shape_cast %8 : vector<128xf32> to vector<1x128xf32>
    %10 = arith.mulf %5, %5 : vector<64x128xf32>
    %cst_8 = arith.constant dense<0.000000e+00> : vector<128xf32>
    %11 = vector.multi_reduction <add>, %10, %cst_8 [0] : vector<64x128xf32> to vector<128xf32>
    %12 = vector.shape_cast %11 : vector<128xf32> to vector<1x128xf32>
    %13 = tpu.iota {dimensions = array<i32: 0>} : vector<2x128xi32>
    %c0_i32 = arith.constant 0 : i32
    %14 = vector.broadcast %c0_i32 : i32 to vector<2x128xi32>
    %15 = arith.cmpi eq, %13, %14 : vector<2x128xi32>
    %16 = vector.shape_cast %9 : vector<1x128xf32> to vector<1x128xf32>
    %17 = vector.broadcast %16 : vector<1x128xf32> to vector<2x128xf32>
    %18 = vector.shape_cast %12 : vector<1x128xf32> to vector<1x128xf32>
    %19 = vector.broadcast %18 : vector<1x128xf32> to vector<2x128xf32>
    %20 = arith.select %15, %17, %19 : vector<2x128xi1>, vector<2x128xf32>
    %21 = vector.shape_cast %20 : vector<2x128xf32> to vector<1x2x128xf32>
    %c0_9 = arith.constant 0 : index
    %c0_10 = arith.constant 0 : index
    %c0_11 = arith.constant 0 : index
    %22 = vector.load %arg5[%c0_9, %c0_10, %c0_11] : memref<1x2x128xf32, #tpu.memory_space<vmem>>, vector<1x2x128xf32>
    tpu.vector_store %arg5[%c0_9, %c0_10, %c0_11], %21 {strides = array<i32>} : memref<1x2x128xf32, #tpu.memory_space<vmem>>, vector<1x2x128xf32>,
    return
  }
  func.func @transform_0(%arg0: i32) -> (i32, i32) {
    %c0_i32 = arith.constant 0 : i32
    %c0_i32_0 = arith.constant 0 : i32
    return %arg0, %c0_i32 : i32, i32
  }
  func.func @transform_1(%arg0: i32) -> (i32, i32) {
    %c0_i32 = arith.constant 0 : i32
    %c0_i32_0 = arith.constant 0 : i32
    %c0_i32_1 = arith.constant 0 : i32
    return %c0_i32, %c0_i32_0 : i32, i32
  }
  func.func @transform_2(%arg0: i32) -> (i32, i32) {
    %c0_i32 = arith.constant 0 : i32
    %c0_i32_0 = arith.constant 0 : i32
    %c0_i32_1 = arith.constant 0 : i32
    return %c0_i32, %c0_i32_0 : i32, i32
  }
  func.func @transform_3(%arg0: i32) -> (i32, i32) {
    %c0_i32 = arith.constant 0 : i32
    %c0_i32_0 = arith.constant 0 : i32
    return %arg0, %c0_i32 : i32, i32
  }
  func.func @transform_4(%arg0: i32) -> (i32, i32, i32) {
    %c0_i32 = arith.constant 0 : i32
    %c0_i32_0 = arith.constant 0 : i32
    %c0_i32_1 = arith.constant 0 : i32
    return %arg0, %c0_i32, %c0_i32_0 : i32, i32, i32
  }
}

module attributes {stable_mosaic.version = 11 : i64} {
  func.func @_act_mm_bn_stats_kernel(%arg0: i32, %arg1: memref<64x72xbf16, #tpu.memory_space<vmem>>, %arg2: memref<72x128xbf16, #tpu.memory_space<vmem>>, %arg3: memref<1x128xf32, #tpu.memory_space<vmem>>, %arg4: memref<1x72xf32, #tpu.memory_space<vmem>>, %arg5: memref<1x72xf32, #tpu.memory_space<vmem>>, %arg6: memref<64x128xbf16, #tpu.memory_space<vmem>>, %arg7: memref<1x2x128xf32, #tpu.memory_space<vmem>>) attributes {dimension_semantics = [#tpu.dimension_semantics<parallel>], iteration_bounds = array<i64: 2>, scalar_prefetch = 0 : i64, scratch_operands = 0 : i64, tpu.core_type = #tpu.core_type<tc>, window_params = [{transform_indices = @transform_0, window_bounds = array<i64: 64, 72>}, {pipeline_mode = #tpu.pipeline_mode<synchronous>, transform_indices = @transform_1, window_bounds = array<i64: 72, 128>}, {pipeline_mode = #tpu.pipeline_mode<synchronous>, transform_indices = @transform_2, window_bounds = array<i64: 1, 128>}, {pipeline_mode = #tpu.pipeline_mode<synchronous>, transform_indices = @transform_3, window_bounds = array<i64: 1, 72>}, {pipeline_mode = #tpu.pipeline_mode<synchronous>, transform_indices = @transform_4, window_bounds = array<i64: 1, 72>}, {transform_indices = @transform_5, window_bounds = array<i64: 64, 128>}, {transform_indices = @transform_6, window_bounds = array<i64: 1, 2, 128>}]} {
    %c0 = arith.constant 0 : index
    %c0_0 = arith.constant 0 : index
    %0 = vector.load %arg1[%c0, %c0_0] : memref<64x72xbf16, #tpu.memory_space<vmem>>, vector<64x72xbf16>
    %1 = arith.extf %0 : vector<64x72xbf16> to vector<64x72xf32>
    %c0_1 = arith.constant 0 : index
    %c0_2 = arith.constant 0 : index
    %2 = vector.load %arg4[%c0_1, %c0_2] : memref<1x72xf32, #tpu.memory_space<vmem>>, vector<1x72xf32>
    %3 = vector.broadcast %2 : vector<1x72xf32> to vector<64x72xf32>
    %4 = arith.mulf %1, %3 : vector<64x72xf32>
    %c0_3 = arith.constant 0 : index
    %c0_4 = arith.constant 0 : index
    %5 = vector.load %arg5[%c0_3, %c0_4] : memref<1x72xf32, #tpu.memory_space<vmem>>, vector<1x72xf32>
    %6 = vector.broadcast %5 : vector<1x72xf32> to vector<64x72xf32>
    %7 = arith.addf %4, %6 : vector<64x72xf32>
    %cst = arith.constant 0.000000e+00 : f32
    %8 = vector.broadcast %cst : f32 to vector<64x72xf32>
    %9 = arith.cmpf oge, %7, %8 : vector<64x72xf32>
    %cst_5 = arith.constant 1.000000e-01 : f32
    %10 = vector.broadcast %cst_5 : f32 to vector<64x72xf32>
    %11 = arith.mulf %10, %7 : vector<64x72xf32>
    %12 = arith.select %9, %7, %11 : vector<64x72xi1>, vector<64x72xf32>
    %13 = arith.truncf %12 : vector<64x72xf32> to vector<64x72xbf16>
    %c0_6 = arith.constant 0 : index
    %c0_7 = arith.constant 0 : index
    %14 = vector.load %arg2[%c0_6, %c0_7] : memref<72x128xbf16, #tpu.memory_space<vmem>>, vector<72x128xbf16>
    %cst_8 = arith.constant dense<0.000000e+00> : vector<64x128xf32>
    %15 = tpu.matmul %13, %14, %cst_8 {dimension_numbers = #tpu.dot_dimension_numbers<[1], [0], [0], [1], [0, 0, 1, 1], [], []>} : vector<64x72xbf16>, vector<72x128xbf16>, vector<64x128xf32> -> vector<64x128xf32>
    %c0_9 = arith.constant 0 : index
    %c0_10 = arith.constant 0 : index
    %16 = vector.load %arg3[%c0_9, %c0_10] : memref<1x128xf32, #tpu.memory_space<vmem>>, vector<1x128xf32>
    %17 = vector.broadcast %16 : vector<1x128xf32> to vector<64x128xf32>
    %18 = arith.addf %15, %17 : vector<64x128xf32>
    %19 = arith.truncf %18 : vector<64x128xf32> to vector<64x128xbf16>
    %c0_11 = arith.constant 0 : index
    %c0_12 = arith.constant 0 : index
    %20 = vector.load %arg6[%c0_11, %c0_12] : memref<64x128xbf16, #tpu.memory_space<vmem>>, vector<64x128xbf16>
    tpu.vector_store %arg6[%c0_11, %c0_12], %19 {strides = array<i32>} : memref<64x128xbf16, #tpu.memory_space<vmem>>, vector<64x128xbf16>,
    %cst_13 = arith.constant dense<0.000000e+00> : vector<128xf32>
    %21 = vector.multi_reduction <add>, %18, %cst_13 [0] : vector<64x128xf32> to vector<128xf32>
    %22 = vector.shape_cast %21 : vector<128xf32> to vector<1x128xf32>
    %23 = arith.mulf %18, %18 : vector<64x128xf32>
    %cst_14 = arith.constant dense<0.000000e+00> : vector<128xf32>
    %24 = vector.multi_reduction <add>, %23, %cst_14 [0] : vector<64x128xf32> to vector<128xf32>
    %25 = vector.shape_cast %24 : vector<128xf32> to vector<1x128xf32>
    %26 = tpu.iota {dimensions = array<i32: 0>} : vector<2x128xi32>
    %c0_i32 = arith.constant 0 : i32
    %27 = vector.broadcast %c0_i32 : i32 to vector<2x128xi32>
    %28 = arith.cmpi eq, %26, %27 : vector<2x128xi32>
    %29 = vector.shape_cast %22 : vector<1x128xf32> to vector<1x128xf32>
    %30 = vector.broadcast %29 : vector<1x128xf32> to vector<2x128xf32>
    %31 = vector.shape_cast %25 : vector<1x128xf32> to vector<1x128xf32>
    %32 = vector.broadcast %31 : vector<1x128xf32> to vector<2x128xf32>
    %33 = arith.select %28, %30, %32 : vector<2x128xi1>, vector<2x128xf32>
    %34 = vector.shape_cast %33 : vector<2x128xf32> to vector<1x2x128xf32>
    %c0_15 = arith.constant 0 : index
    %c0_16 = arith.constant 0 : index
    %c0_17 = arith.constant 0 : index
    %35 = vector.load %arg7[%c0_15, %c0_16, %c0_17] : memref<1x2x128xf32, #tpu.memory_space<vmem>>, vector<1x2x128xf32>
    tpu.vector_store %arg7[%c0_15, %c0_16, %c0_17], %34 {strides = array<i32>} : memref<1x2x128xf32, #tpu.memory_space<vmem>>, vector<1x2x128xf32>,
    return
  }
  func.func @transform_0(%arg0: i32) -> (i32, i32) {
    %c0_i32 = arith.constant 0 : i32
    %c0_i32_0 = arith.constant 0 : i32
    return %arg0, %c0_i32 : i32, i32
  }
  func.func @transform_1(%arg0: i32) -> (i32, i32) {
    %c0_i32 = arith.constant 0 : i32
    %c0_i32_0 = arith.constant 0 : i32
    %c0_i32_1 = arith.constant 0 : i32
    return %c0_i32, %c0_i32_0 : i32, i32
  }
  func.func @transform_2(%arg0: i32) -> (i32, i32) {
    %c0_i32 = arith.constant 0 : i32
    %c0_i32_0 = arith.constant 0 : i32
    %c0_i32_1 = arith.constant 0 : i32
    return %c0_i32, %c0_i32_0 : i32, i32
  }
  func.func @transform_3(%arg0: i32) -> (i32, i32) {
    %c0_i32 = arith.constant 0 : i32
    %c0_i32_0 = arith.constant 0 : i32
    %c0_i32_1 = arith.constant 0 : i32
    return %c0_i32, %c0_i32_0 : i32, i32
  }
  func.func @transform_4(%arg0: i32) -> (i32, i32) {
    %c0_i32 = arith.constant 0 : i32
    %c0_i32_0 = arith.constant 0 : i32
    %c0_i32_1 = arith.constant 0 : i32
    return %c0_i32, %c0_i32_0 : i32, i32
  }
  func.func @transform_5(%arg0: i32) -> (i32, i32) {
    %c0_i32 = arith.constant 0 : i32
    %c0_i32_0 = arith.constant 0 : i32
    return %arg0, %c0_i32 : i32, i32
  }
  func.func @transform_6(%arg0: i32) -> (i32, i32, i32) {
    %c0_i32 = arith.constant 0 : i32
    %c0_i32_0 = arith.constant 0 : i32
    %c0_i32_1 = arith.constant 0 : i32
    return %arg0, %c0_i32, %c0_i32_0 : i32, i32, i32
  }
}

module attributes {stable_mosaic.version = 11 : i64} {
  func.func @_bn_proj_add_lrelu_kernel(%arg0: i32, %arg1: memref<64x128xbf16, #tpu.memory_space<vmem>>, %arg2: memref<64x4xbf16, #tpu.memory_space<vmem>>, %arg3: memref<4x128xbf16, #tpu.memory_space<vmem>>, %arg4: memref<1x128xf32, #tpu.memory_space<vmem>>, %arg5: memref<1x128xf32, #tpu.memory_space<vmem>>, %arg6: memref<1x128xf32, #tpu.memory_space<vmem>>, %arg7: memref<64x128xf32, #tpu.memory_space<vmem>>) attributes {dimension_semantics = [#tpu.dimension_semantics<parallel>], iteration_bounds = array<i64: 2>, scalar_prefetch = 0 : i64, scratch_operands = 0 : i64, tpu.core_type = #tpu.core_type<tc>, window_params = [{transform_indices = @transform_0, window_bounds = array<i64: 64, 128>}, {transform_indices = @transform_1, window_bounds = array<i64: 64, 4>}, {pipeline_mode = #tpu.pipeline_mode<synchronous>, transform_indices = @transform_2, window_bounds = array<i64: 4, 128>}, {pipeline_mode = #tpu.pipeline_mode<synchronous>, transform_indices = @transform_3, window_bounds = array<i64: 1, 128>}, {pipeline_mode = #tpu.pipeline_mode<synchronous>, transform_indices = @transform_4, window_bounds = array<i64: 1, 128>}, {pipeline_mode = #tpu.pipeline_mode<synchronous>, transform_indices = @transform_5, window_bounds = array<i64: 1, 128>}, {transform_indices = @transform_6, window_bounds = array<i64: 64, 128>}]} {
    %c0 = arith.constant 0 : index
    %c0_0 = arith.constant 0 : index
    %0 = vector.load %arg1[%c0, %c0_0] : memref<64x128xbf16, #tpu.memory_space<vmem>>, vector<64x128xbf16>
    %1 = arith.extf %0 : vector<64x128xbf16> to vector<64x128xf32>
    %c0_1 = arith.constant 0 : index
    %c0_2 = arith.constant 0 : index
    %2 = vector.load %arg5[%c0_1, %c0_2] : memref<1x128xf32, #tpu.memory_space<vmem>>, vector<1x128xf32>
    %3 = vector.broadcast %2 : vector<1x128xf32> to vector<64x128xf32>
    %4 = arith.mulf %1, %3 : vector<64x128xf32>
    %c0_3 = arith.constant 0 : index
    %c0_4 = arith.constant 0 : index
    %5 = vector.load %arg6[%c0_3, %c0_4] : memref<1x128xf32, #tpu.memory_space<vmem>>, vector<1x128xf32>
    %6 = vector.broadcast %5 : vector<1x128xf32> to vector<64x128xf32>
    %7 = arith.addf %4, %6 : vector<64x128xf32>
    %c0_5 = arith.constant 0 : index
    %c0_6 = arith.constant 0 : index
    %8 = vector.load %arg2[%c0_5, %c0_6] : memref<64x4xbf16, #tpu.memory_space<vmem>>, vector<64x4xbf16>
    %c0_7 = arith.constant 0 : index
    %c0_8 = arith.constant 0 : index
    %9 = vector.load %arg3[%c0_7, %c0_8] : memref<4x128xbf16, #tpu.memory_space<vmem>>, vector<4x128xbf16>
    %cst = arith.constant dense<0.000000e+00> : vector<64x128xf32>
    %10 = tpu.matmul %8, %9, %cst {dimension_numbers = #tpu.dot_dimension_numbers<[1], [0], [0], [1], [0, 0, 1, 1], [], []>} : vector<64x4xbf16>, vector<4x128xbf16>, vector<64x128xf32> -> vector<64x128xf32>
    %c0_9 = arith.constant 0 : index
    %c0_10 = arith.constant 0 : index
    %11 = vector.load %arg4[%c0_9, %c0_10] : memref<1x128xf32, #tpu.memory_space<vmem>>, vector<1x128xf32>
    %12 = vector.broadcast %11 : vector<1x128xf32> to vector<64x128xf32>
    %13 = arith.addf %10, %12 : vector<64x128xf32>
    %14 = arith.addf %7, %13 : vector<64x128xf32>
    %cst_11 = arith.constant 0.000000e+00 : f32
    %15 = vector.broadcast %cst_11 : f32 to vector<64x128xf32>
    %16 = arith.cmpf oge, %14, %15 : vector<64x128xf32>
    %cst_12 = arith.constant 1.000000e-01 : f32
    %17 = vector.broadcast %cst_12 : f32 to vector<64x128xf32>
    %18 = arith.mulf %17, %14 : vector<64x128xf32>
    %19 = arith.select %16, %14, %18 : vector<64x128xi1>, vector<64x128xf32>
    %c0_13 = arith.constant 0 : index
    %c0_14 = arith.constant 0 : index
    %20 = vector.load %arg7[%c0_13, %c0_14] : memref<64x128xf32, #tpu.memory_space<vmem>>, vector<64x128xf32>
    tpu.vector_store %arg7[%c0_13, %c0_14], %19 {strides = array<i32>} : memref<64x128xf32, #tpu.memory_space<vmem>>, vector<64x128xf32>,
    return
  }
  func.func @transform_0(%arg0: i32) -> (i32, i32) {
    %c0_i32 = arith.constant 0 : i32
    %c0_i32_0 = arith.constant 0 : i32
    return %arg0, %c0_i32 : i32, i32
  }
  func.func @transform_1(%arg0: i32) -> (i32, i32) {
    %c0_i32 = arith.constant 0 : i32
    %c0_i32_0 = arith.constant 0 : i32
    return %arg0, %c0_i32 : i32, i32
  }
  func.func @transform_2(%arg0: i32) -> (i32, i32) {
    %c0_i32 = arith.constant 0 : i32
    %c0_i32_0 = arith.constant 0 : i32
    %c0_i32_1 = arith.constant 0 : i32
    return %c0_i32, %c0_i32_0 : i32, i32
  }
  func.func @transform_3(%arg0: i32) -> (i32, i32) {
    %c0_i32 = arith.constant 0 : i32
    %c0_i32_0 = arith.constant 0 : i32
    %c0_i32_1 = arith.constant 0 : i32
    return %c0_i32, %c0_i32_0 : i32, i32
  }
  func.func @transform_4(%arg0: i32) -> (i32, i32) {
    %c0_i32 = arith.constant 0 : i32
    %c0_i32_0 = arith.constant 0 : i32
    %c0_i32_1 = arith.constant 0 : i32
    return %c0_i32, %c0_i32_0 : i32, i32
  }
  func.func @transform_5(%arg0: i32) -> (i32, i32) {
    %c0_i32 = arith.constant 0 : i32
    %c0_i32_0 = arith.constant 0 : i32
    %c0_i32_1 = arith.constant 0 : i32
    return %c0_i32, %c0_i32_0 : i32, i32
  }
  func.func @transform_6(%arg0: i32) -> (i32, i32) {
    %c0_i32 = arith.constant 0 : i32
    %c0_i32_0 = arith.constant 0 : i32
    return %arg0, %c0_i32 : i32, i32
  }
}

</mosaic_0001>

<bundles_post_ra>
// kernel: _residual_forward_impl.3
= control target key start
LH: loop header
LB: loop body
LE: loop exit
PB: predicated region body
PF: predicated region fallthrough
CT: control target
= control target key end

     0   :  { %s656_s15 = smov 0   ;;  %s700_s0 = inlined_call_operand.vmem [shape: bf16[128,40], index: 0, kind: input, shape index: {}]   ;;  %s701_s1 = inlined_call_operand.vmem [shape: bf16[40,128], index: 1, kind: input, shape index: {}]   ;;  %s702_s2 = inlined_call_operand.vmem [shape: f32[1,128], index: 2, kind: input, shape index: {}]   ;;  %s703_s3 = inlined_call_operand.vmem [shape: bf16[128,128], index: 3, kind: output, shape index: {0}]   ;;  %s704_s4 = inlined_call_operand.vmem [shape: f32[2,2,128], index: 4, kind: output, shape index: {1}]  }
   0x1 LB: > { %s662_s16 = sadd.s32 4294967295, %s629_s15   ;;  %p520_p0 = scmp.ge.s32.totalorder %s629_s15, 1  ;;  %s629_s15 = sphi %s656_s15, %s15_s15  }
   0x2   : > { %p166_p1 = scmp.lt.s32.totalorder %s629_s15, 3 }
   0x4   : > { %p167_p2 = pnand %p520_p0, %p166_p1 }
   0x5   : > { %v616_v0 = vld [vmem:[%s701_s1] sm:$0xff] (!%p167_p2)   ;;  %v617_v1 = vld [vmem:[%s701_s1 + $0x8] sm:$0xff] (!%p167_p2)   ;;  %s521_s21 = sshll.u32 (!%p167_p2), %s662_s16, 3  ;;  %v618_v2 = vld [vmem:[%s701_s1 + $0x10] ss:$0 sps:$4 sm:$0xff] (!%p167_p2)   ;;  %vm281_vm0 = vcmask (!%p167_p2), 1043456   ;;  %v424_v54 = vlaneseq (!%p167_p2) }
   0x6   : > { %170 = sbr.rel (%p167_p2) target bundleno = 265 (0x109), region = 32  ;;  %586 = vmatprep.subr.bf16.mxu0 (!%p167_p2), %v616_v0  ;;  %600 = vmatprep.subr.bf16.mxu1 (!%p167_p2), %v616_v0  ;;  %p197_p3 = scmp.lt.s32.totalorder (!%p167_p2), %s521_s21, 15  ;;  %vm268_vm1 = vcmask (!%p167_p2), 326656   ;;  %v283_v3 = vsel (!%p167_p2), %vm281_vm0, %v618_v2, 0  ;;  %v526_v8 = vld [vmem:[%s702_s2] ss:$0 sm:$0xff] (!%p167_p2) }
   0x7   : > { %587 = vmatpush3.bf16.msra.mxu0 (!%p167_p2), %v616_v0  ;;  %603 = vmatpush3.bf16.msra.mxu1 (!%p167_p2), %v616_v0  ;;  %p208_p4 = scmp.lt.s32.totalorder (!%p167_p2), %s662_s16, 1  ;;  %v425_v59 = vshrl.u32 (!%p167_p2), %v424_v54, 7 }
   0x8   : > { %588 = vmatprep.subr.bf16.mxu0 (!%p167_p2), %v617_v1  ;;  %601 = vmatprep.subr.bf16.mxu1 (!%p167_p2), %v617_v1 }
   0x9   : > { %vm426_vm2 = vcmp.eq.s32.totalorder (!%p167_p2), %v425_v59, 0 }
   0xb   : > { %589 = vmatpush3.bf16.msra.mxu0 (!%p167_p2), %v617_v1  ;;  %604 = vmatpush3.bf16.msra.mxu1 (!%p167_p2), %v617_v1 }
   0xc   : > { %606 = vmatprep.subr.msk.bf16.mxu0 (!%p167_p2), %vm281_vm0, %v618_v2  ;;  %607 = vmatprep.subr.msk.bf16.mxu1 (!%p167_p2), %vm281_vm0, %v618_v2 }
   0xd   : > { %s706_s21 = smov (!%p197_p3, %s521_s21), 15  ;;  %s708_s16 = smov (!%p208_p4, %s662_s16), 1 }
   0xe   : > { %s522_s24 = sshll.u32 %s706_s21, 2  ;;  %s525_s7 = sshll.u32 %s708_s16, 1 }
   0xf   : > { %s200_s27 = scalar_lea.vmem %s700_s0, %s522_s24  ;;  %591 = vmatpush3.bf16.msra.mxu0 %v283_v3  ;;  %605 = vmatpush3.bf16.msra.mxu1 %v283_v3  ;;  %s206_s6 = scalar_lea.vmem %s703_s3, %s522_s24 }
  0x10   : > { %v619_v4 = vld [vmem:[%s200_s27] sm:$0xff]   ;;  %v620_v5 = vld [vmem:[%s200_s27 + $0x8] sm:$0xff]   ;;  %v621_v6 = vld [vmem:[%s200_s27 + $0x10] sm:$0xff]   ;;  %s211_s10 = scalar_lea.vmem %s704_s4, %s525_s7 }
  0x11   : > { %592 = vmatprep.mubr.msk.bf16.mxu0 %vm268_vm1, %v619_v4  ;;  %v622_v7 = vld [vmem:[%s200_s27 + $0x18] sm:$0xff]   ;;  %596 = vmatprep.mubr.msk.bf16.mxu1 %vm268_vm1, %v621_v6 }
  0x12   : > { %593 = vmatmul.mubr.msk.bf16.vlgmr.msra.gmra.mrb[0].mxu0 %vm268_vm1, %v620_v5  ;;  %597 = vmatmul.mubr.msk.bf16.vlgmr.msra.gmra.mrb[0].mxu1 %vm268_vm1, %v622_v7 }
  0xe5   : > { %v594_v9 = vpop.f32.mrb[0].mxu0  ;;  %v598_v10 = vpop.f32.mrb[0].mxu1 }
  0xe6   : > { %v319_v11 = vpop.f32.mrb[1].mxu0  ;;  %v344_v12 = vadd.f32 %v598_v10, %v526_v8  ;;  %v335_v13 = vpop.f32.mrb[1].mxu1  ;;  %v328_v18 = vadd.f32 %v594_v9, %v526_v8 }
  0xe7   : > { %v320_v14 = vadd.f32 %v526_v8, %v319_v11  ;;  %v595_v15 = vpop.f32.mrb[2].mxu0  ;;  %v336_v16 = vadd.f32 %v526_v8, %v335_v13  ;;  %v599_v17 = vpop.f32.mrb[2].mxu1 }
  0xe8   : > { %v331_v19 = vadd.f32 %v595_v15, %v526_v8  ;;  %v322_v20 = vpop.f32.mrb[3].mxu0  ;;  %v347_v21 = vadd.f32 %v599_v17, %v526_v8  ;;  %v338_v22 = vpop.f32.mrb[3].mxu1  ;;  %v405_v32 = vmul.f32 %v328_v18, %v328_v18  ;;  %v409_v44 = vmul.f32 %v344_v12, %v344_v12 }
  0xe9   : > { %v323_v23 = vadd.f32 %v526_v8, %v322_v20  ;;  %v339_v24 = vadd.f32 %v526_v8, %v338_v22  ;;  %v403_v25 = vmul.f32 %v320_v14, %v320_v14  ;;  %v407_v38 = vmul.f32 %v336_v16, %v336_v16 }
  0xea   : > { %v564_v26 = vpack.c.bf16 %v331_v19, %v328_v18  ;;  %v574_v27 = vpack.c.bf16 %v347_v21, %v344_v12  ;;  %v406_v35 = vmul.f32 %v331_v19, %v331_v19  ;;  %v410_v47 = vmul.f32 %v347_v21, %v347_v21 }
  0xeb   : > { %v559_v28 = vpack.c.bf16 %v323_v23, %v320_v14  ;;  %v390_v29 = vadd.f32 %v323_v23, %v320_v14  ;;  %v404_v30 = vmul.f32 %v323_v23, %v323_v23  ;;  %v569_v31 = vpack.c.bf16 %v339_v24, %v336_v16 }
  0xec   : > { %576 = vst [vmem:[%s206_s6 + $0x8] sm:$0xff] %v564_v26   ;;  %578 = vst [vmem:[%s206_s6 + $0x18] sm:$0xff] %v574_v27   ;;  %v408_v43 = vmul.f32 %v339_v24, %v339_v24 }
  0xed   : > { %560 = vst [vmem:[%s206_s6] sm:$0xff] %v559_v28   ;;  %v391_v33 = vadd.f32 %v390_v29, %v328_v18  ;;  %v411_v34 = vadd.f32 %v404_v30, %v403_v25  ;;  %577 = vst [vmem:[%s206_s6 + $0x10] sm:$0xff] %v569_v31  }
  0xef   : > { %v412_v36 = vadd.f32 %v411_v34, %v405_v32  ;;  %v392_v37 = vadd.f32 %v391_v33, %v331_v19 }
  0xf1   : > { %v393_v39 = vadd.f32 %v392_v37, %v336_v16  ;;  %v413_v40 = vadd.f32 %v412_v36, %v406_v35 }
  0xf3   : > { %v414_v41 = vadd.f32 %v413_v40, %v407_v38  ;;  %v394_v42 = vadd.f32 %v393_v39, %v339_v24 }
  0xf5   : > { %v395_v45 = vadd.f32 %v394_v42, %v344_v12  ;;  %v415_v46 = vadd.f32 %v414_v41, %v408_v43 }
  0xf7   : > { %v396_v48 = vadd.f32 %v395_v45, %v347_v21  ;;  %v416_v49 = vadd.f32 %v415_v46, %v409_v44 }
  0xf9   : > { %v397_v50 = vrot.slane %v396_v48, 4  ;;  %v417_v51 = vadd.f32 %v416_v49, %v410_v47 }
  0xfb   : > { %v398_v52 = vadd.f32 %v397_v50, %v396_v48  ;;  %v418_v53 = vrot.slane %v417_v51, 4 }
  0xfd   : > { %v399_v55 = vrot.slane %v398_v52, 2  ;;  %v419_v56 = vadd.f32 %v418_v53, %v417_v51 }
  0xff   : > { %v400_v57 = vadd.f32 %v399_v55, %v398_v52  ;;  %v420_v58 = vrot.slane %v419_v56, 2 }
 0x101   : > { %v401_v60 = vrot.slane %v400_v57, 1  ;;  %v421_v61 = vadd.f32 %v420_v58, %v419_v56 }
 0x103   : > { %v422_v62 = vrot.slane %v421_v61, 1  ;;  %v402_v63 = vadd.f32 %v401_v60, %v400_v57 }
 0x105   : > { %v423_v0 = vadd.f32 %v422_v62, %v421_v61 }
 0x107   : > { %v427_v1 = vsel %vm426_vm2, %v402_v63, %v423_v0 }
 0x108   : > { %428 = vst [vmem:[%s211_s10] sm:$0x3] %v427_v1 }
 0x109 PF: > { %s15_s15 = sadd.s32 1, %s629_s15  }
 0x10a   : > { %p12_p5 = scmp.ge.s32.totalorder %s15_s15, 4  }
 0x10c   :  { %14 = sbr.rel (!%p12_p5) target bundleno = 1 (0x1), region = 74 }

// kernel: _residual_forward_impl.4
= control target key start
LH: loop header
LB: loop body
LE: loop exit
PB: predicated region body
PF: predicated region fallthrough
CT: control target
= control target key end

     0   :  { %s809_s21 = smov 0   ;;  %s872_s0 = inlined_call_operand.vmem [shape: bf16[128,72], index: 0, kind: input, shape index: {}]   ;;  %s873_s1 = inlined_call_operand.vmem [shape: bf16[72,128], index: 1, kind: input, shape index: {}]   ;;  %s874_s2 = inlined_call_operand.vmem [shape: f32[1,128], index: 2, kind: input, shape index: {}]   ;;  %s875_s3 = inlined_call_operand.vmem [shape: f32[1,72], index: 3, kind: input, shape index: {}]   ;;  %s876_s4 = inlined_call_operand.vmem [shape: f32[1,72], index: 4, kind: input, shape index: {}]   ;;  %s877_s5 = inlined_call_operand.vmem [shape: bf16[128,128], index: 5, kind: output, shape index: {0}]   ;;  %s878_s6 = inlined_call_operand.vmem [shape: f32[2,2,128], index: 6, kind: output, shape index: {1}]  }
   0x1 LB: > { %s815_s22 = sadd.s32 4294967295, %s772_s21   ;;  %p636_p0 = scmp.ge.s32.totalorder %s772_s21, 1  ;;  %s772_s21 = sphi %s809_s21, %s17_s21  }
   0x2   : > { %p216_p1 = scmp.lt.s32.totalorder %s772_s21, 3 }
   0x4   : > { %p217_p2 = pnand %p636_p0, %p216_p1 }
   0x5   : > { %v761_v0 = vld [vmem:[%s873_s1] sm:$0xff] (!%p217_p2)   ;;  %v762_v1 = vld [vmem:[%s873_s1 + $0x8] sm:$0xff] (!%p217_p2)   ;;  %s637_s27 = sshll.u32 (!%p217_p2), %s815_s22, 3  ;;  %v763_v2 = vld [vmem:[%s873_s1 + $0x10] sm:$0xff] (!%p217_p2)   ;;  %vm397_vm0 = vcmask (!%p217_p2), 1043456   ;;  %vm384_vm1 = vcmask (!%p217_p2), 588800  }
   0x6   : > { %220 = sbr.rel (%p217_p2) target bundleno = 276 (0x114), region = 40  ;;  %723 = vmatprep.subr.bf16.mxu0 (!%p217_p2), %v761_v0  ;;  %741 = vmatprep.subr.bf16.mxu1 (!%p217_p2), %v761_v0  ;;  %p251_p3 = scmp.lt.s32.totalorder (!%p217_p2), %s637_s27, 15  ;;  %v764_v3 = vld [vmem:[%s873_s1 + $0x18] sm:$0xff] (!%p217_p2)   ;;  %v765_v4 = vld [vmem:[%s873_s1 + $0x20] ss:$0 sps:$4 sm:$0xff] (!%p217_p2)  }
   0x7   : > { %724 = vmatpush3.bf16.msra.mxu0 (!%p217_p2), %v761_v0  ;;  %746 = vmatpush3.bf16.msra.mxu1 (!%p217_p2), %v761_v0  ;;  %v642_v5 = vld [vmem:[%s875_s3] ss:$0 sm:$0xff] (!%p217_p2)  ;;  %v399_v22 = vsel (!%p217_p2), %vm397_vm0, %v765_v4, 0  ;;  %p262_p4 = scmp.lt.s32.totalorder (!%p217_p2), %s815_s22, 1 }
   0x8   : > { %725 = vmatprep.subr.bf16.mxu0 (!%p217_p2), %v762_v1  ;;  %742 = vmatprep.subr.bf16.mxu1 (!%p217_p2), %v762_v1  ;;  %v643_v14 = vld [vmem:[%s876_s4] ss:$0 sm:$0xff] (!%p217_p2) }
   0x9   : > { %v644_v56 = vld [vmem:[%s874_s2] ss:$0 sm:$0xff] (!%p217_p2) }
   0xb   : > { %726 = vmatpush3.bf16.msra.mxu0 (!%p217_p2), %v762_v1  ;;  %747 = vmatpush3.bf16.msra.mxu1 (!%p217_p2), %v762_v1 }
   0xc   : > { %727 = vmatprep.subr.bf16.mxu0 (!%p217_p2), %v763_v2  ;;  %743 = vmatprep.subr.bf16.mxu1 (!%p217_p2), %v763_v2 }
   0xd   : > { %s880_s27 = smov (!%p251_p3, %s637_s27), 15  ;;  %s882_s22 = smov (!%p262_p4, %s815_s22), 1 }
   0xe   : > { %s638_s30 = sshll.u32 %s880_s27, 2  ;;  %s641_s25 = sshll.u32 %s882_s22, 1 }
   0xf   : > { %s254_s13 = scalar_lea.vmem %s872_s0, %s638_s30  ;;  %728 = vmatpush3.bf16.msra.mxu0 %v763_v2  ;;  %748 = vmatpush3.bf16.msra.mxu1 %v763_v2  ;;  %s260_s24 = scalar_lea.vmem %s877_s5, %s638_s30 }
  0x10   : > { %v673_v6 = vld [vmem:[%s254_s13] sm:$0xff]   ;;  %v708_v7 = vld [vmem:[%s254_s13 + $0x8] sm:$0xff]   ;;  %v709_v8 = vld [vmem:[%s254_s13 + $0x10] sm:$0xff]   ;;  %729 = vmatprep.subr.bf16.mxu0 %v764_v3  ;;  %744 = vmatprep.subr.bf16.mxu1 %v764_v3  ;;  %s265_s28 = scalar_lea.vmem %s878_s6, %s641_s25 }
  0x11   : > { %v674_v9 = vunpack.c.l.bf16 %v673_v6  ;;  %v675_v10 = vunpack.c.h.bf16 %v673_v6  ;;  %v678_v11 = vunpack.c.l.bf16 %v708_v7  ;;  %v679_v12 = vunpack.c.h.bf16 %v708_v7  ;;  %v710_v13 = vld [vmem:[%s254_s13 + $0x18] sm:$0xff]  }
  0x12   : > { %v682_v15 = vunpack.c.l.bf16 %v709_v8  ;;  %v683_v16 = vunpack.c.h.bf16 %v709_v8  ;;  %v686_v17 = vunpack.c.l.bf16 %v710_v13  ;;  %v687_v18 = vunpack.c.h.bf16 %v710_v13 }
  0x13   : > { %v290_v19 = vmul.f32 %v674_v9, %v642_v5  ;;  %v291_v20 = vmul.f32 %v675_v10, %v642_v5  ;;  %v292_v21 = vmul.f32 %v678_v11, %v642_v5  ;;  %v293_v23 = vmul.f32 %v679_v12, %v642_v5  ;;  %730 = vmatpush3.bf16.msra.mxu0 %v764_v3 }
  0x14   : > { %v294_v24 = vmul.f32 %v682_v15, %v642_v5  ;;  %v295_v25 = vmul.f32 %v683_v16, %v642_v5  ;;  %v296_v29 = vmul.f32 %v686_v17, %v642_v5  ;;  %v297_v33 = vmul.f32 %v687_v18, %v642_v5  ;;  %749 = vmatpush3.bf16.msra.mxu1 %v764_v3 }
  0x15   : > { %v305_v26 = vadd.f32 %v643_v14, %v290_v19  ;;  %v306_v27 = vadd.f32 %v643_v14, %v291_v20  ;;  %v307_v28 = vadd.f32 %v643_v14, %v292_v21  ;;  %v308_v30 = vadd.f32 %v643_v14, %v293_v23  ;;  %751 = vmatprep.subr.msk.bf16.mxu0 %vm397_vm0, %v765_v4 }
  0x16   : > { %v309_v31 = vadd.f32 %v643_v14, %v294_v24  ;;  %v310_v32 = vadd.f32 %v643_v14, %v295_v25  ;;  %752 = vmatprep.subr.msk.bf16.mxu1 %vm397_vm0, %v765_v4  ;;  %v311_v46 = vadd.f32 %v643_v14, %v296_v29  ;;  %v312_v47 = vadd.f32 %v643_v14, %v297_v33 }
  0x17   : > { %vm313_vm2 = vcmp.ge.f32.partialorder %v305_v26, 0.0  ;;  %vm314_vm3 = vcmp.ge.f32.partialorder %v306_v27, 0.0  ;;  %v321_v34 = vmul.f32 0.1, %v305_v26  ;;  %v322_v35 = vmul.f32 0.1, %v306_v27  ;;  %732 = vmatpush3.bf16.msra.mxu0 %v399_v22 }
  0x18   : > { %vm315_vm4 = vcmp.ge.f32.partialorder %v307_v28, 0.0  ;;  %vm316_vm5 = vcmp.ge.f32.partialorder %v308_v30, 0.0  ;;  %v323_v36 = vmul.f32 0.1, %v307_v28  ;;  %v324_v37 = vmul.f32 0.1, %v308_v30  ;;  %750 = vmatpush3.bf16.msra.mxu1 %v399_v22 }
  0x19   : > { %v329_v38 = vsel %vm313_vm2, %v305_v26, %v321_v34  ;;  %v330_v39 = vsel %vm314_vm3, %v306_v27, %v322_v35  ;;  %vm317_vm6 = vcmp.ge.f32.partialorder %v309_v31, 0.0  ;;  %vm318_vm7 = vcmp.ge.f32.partialorder %v310_v32, 0.0 }
  0x1a   : > { %v337_v40 = vpack.c.bf16 %v330_v39, %v329_v38  ;;  %v331_v41 = vsel %vm315_vm4, %v307_v28, %v323_v36  ;;  %v332_v42 = vsel %vm316_vm5, %v308_v30, %v324_v37  ;;  %v325_v43 = vmul.f32 0.1, %v309_v31 }
  0x1b   : > { %v338_v44 = vpack.c.bf16 %v332_v42, %v331_v41  ;;  %v326_v45 = vmul.f32 0.1, %v310_v32  ;;  %vm319_vm8 = vcmp.ge.f32.partialorder %v311_v46, 0.0  ;;  %vm320_vm9 = vcmp.ge.f32.partialorder %v312_v47, 0.0 }
  0x1c   : > { %733 = vmatprep.mubr.msk.bf16.mxu0 %vm384_vm1, %v337_v40  ;;  %v333_v48 = vsel %vm317_vm6, %v309_v31, %v325_v43  ;;  %v327_v50 = vmul.f32 0.1, %v311_v46  ;;  %v328_v52 = vmul.f32 0.1, %v312_v47  ;;  %v540_v38 = vlaneseq }
  0x1d   : > { %v334_v49 = vsel %vm318_vm7, %v310_v32, %v326_v45  ;;  %734 = vmatmul.mubr.msk.bf16.vlgmr.msra.gmra.mrb[0].mxu0 %vm384_vm1, %v338_v44 }
  0x1e   : > { %v339_v51 = vpack.c.bf16 %v334_v49, %v333_v48  ;;  %v335_v53 = vsel %vm319_vm8, %v311_v46, %v327_v50  ;;  %v336_v54 = vsel %vm320_vm9, %v312_v47, %v328_v52  ;;  %v541_v43 = vshrl.u32 %v540_v38, 7 }
  0x1f   : > { %v340_v55 = vpack.c.bf16 %v336_v54, %v335_v53 }
  0x20   : > { %737 = vmatprep.mubr.msk.bf16.mxu1 %vm384_vm1, %v339_v51  ;;  %vm542_vm10 = vcmp.eq.s32.totalorder %v541_v43, 0 }
  0x21   : > { %738 = vmatmul.mubr.msk.bf16.vlgmr.msra.gmra.mrb[0].mxu1 %vm384_vm1, %v340_v55 }
  0xf0   : > { %v735_v57 = vpop.f32.mrb[0].mxu0 }
  0xf1   : > { %v435_v58 = vpop.f32.mrb[1].mxu0  ;;  %v444_v61 = vadd.f32 %v735_v57, %v644_v56 }
  0xf2   : > { %v436_v59 = vadd.f32 %v644_v56, %v435_v58  ;;  %v736_v60 = vpop.f32.mrb[2].mxu0 }
  0xf3   : > { %v447_v62 = vadd.f32 %v736_v60, %v644_v56  ;;  %v438_v63 = vpop.f32.mrb[3].mxu0  ;;  %v521_v11 = vmul.f32 %v444_v61, %v444_v61 }
  0xf4   : > { %v439_v0 = vadd.f32 %v644_v56, %v438_v63  ;;  %v519_v1 = vmul.f32 %v436_v59, %v436_v59  ;;  %v739_v3 = vpop.f32.mrb[0].mxu1 }
  0xf5   : > { %v696_v2 = vpack.c.bf16 %v447_v62, %v444_v61  ;;  %v460_v7 = vadd.f32 %v739_v3, %v644_v56  ;;  %v451_v8 = vpop.f32.mrb[1].mxu1  ;;  %v522_v16 = vmul.f32 %v447_v62, %v447_v62 }
  0xf6   : > { %v691_v4 = vpack.c.bf16 %v439_v0, %v436_v59  ;;  %v506_v5 = vadd.f32 %v439_v0, %v436_v59  ;;  %v520_v6 = vmul.f32 %v439_v0, %v439_v0  ;;  %v452_v9 = vadd.f32 %v644_v56, %v451_v8  ;;  %v740_v10 = vpop.f32.mrb[2].mxu1 }
  0xf7   : > { %711 = vst [vmem:[%s260_s24 + $0x8] sm:$0xff] %v696_v2   ;;  %v463_v14 = vadd.f32 %v740_v10, %v644_v56  ;;  %v454_v15 = vpop.f32.mrb[3].mxu1  ;;  %v525_v28 = vmul.f32 %v460_v7, %v460_v7 }
  0xf8   : > { %692 = vst [vmem:[%s260_s24] sm:$0xff] %v691_v4   ;;  %v507_v12 = vadd.f32 %v506_v5, %v444_v61  ;;  %v527_v13 = vadd.f32 %v520_v6, %v519_v1  ;;  %v455_v17 = vadd.f32 %v644_v56, %v454_v15  ;;  %v523_v20 = vmul.f32 %v452_v9, %v452_v9 }
  0xf9   : > { %v706_v21 = vpack.c.bf16 %v463_v14, %v460_v7  ;;  %v526_v31 = vmul.f32 %v463_v14, %v463_v14 }
  0xfa   : > { %v528_v18 = vadd.f32 %v527_v13, %v521_v11  ;;  %v508_v19 = vadd.f32 %v507_v12, %v447_v62  ;;  %v701_v22 = vpack.c.bf16 %v455_v17, %v452_v9  ;;  %v524_v27 = vmul.f32 %v455_v17, %v455_v17 }
  0xfb   : > { %713 = vst [vmem:[%s260_s24 + $0x18] sm:$0xff] %v706_v21  }
  0xfc   : > { %v509_v23 = vadd.f32 %v508_v19, %v452_v9  ;;  %v529_v24 = vadd.f32 %v528_v18, %v522_v16  ;;  %712 = vst [vmem:[%s260_s24 + $0x10] sm:$0xff] %v701_v22  }
  0xfe   : > { %v530_v25 = vadd.f32 %v529_v24, %v523_v20  ;;  %v510_v26 = vadd.f32 %v509_v23, %v455_v17 }
 0x100   : > { %v511_v29 = vadd.f32 %v510_v26, %v460_v7  ;;  %v531_v30 = vadd.f32 %v530_v25, %v524_v27 }
 0x102   : > { %v512_v32 = vadd.f32 %v511_v29, %v463_v14  ;;  %v532_v33 = vadd.f32 %v531_v30, %v525_v28 }
 0x104   : > { %v513_v34 = vrot.slane %v512_v32, 4  ;;  %v533_v35 = vadd.f32 %v532_v33, %v526_v31 }
 0x106   : > { %v514_v36 = vadd.f32 %v513_v34, %v512_v32  ;;  %v534_v37 = vrot.slane %v533_v35, 4 }
 0x108   : > { %v515_v39 = vrot.slane %v514_v36, 2  ;;  %v535_v40 = vadd.f32 %v534_v37, %v533_v35 }
 0x10a   : > { %v516_v41 = vadd.f32 %v515_v39, %v514_v36  ;;  %v536_v42 = vrot.slane %v535_v40, 2 }
 0x10c   : > { %v517_v44 = vrot.slane %v516_v41, 1  ;;  %v537_v45 = vadd.f32 %v536_v42, %v535_v40 }
 0x10e   : > { %v538_v46 = vrot.slane %v537_v45, 1  ;;  %v518_v47 = vadd.f32 %v517_v44, %v516_v41 }
 0x110   : > { %v539_v48 = vadd.f32 %v538_v46, %v537_v45 }
 0x112   : > { %v543_v49 = vsel %vm542_vm10, %v518_v47, %v539_v48 }
 0x113   : > { %544 = vst [vmem:[%s265_s28] sm:$0x3] %v543_v49 }
 0x114 PF: > { %s17_s21 = sadd.s32 1, %s772_s21  }
 0x115   : > { %p14_p5 = scmp.ge.s32.totalorder %s17_s21, 4  }
 0x117   :  { %16 = sbr.rel (!%p14_p5) target bundleno = 1 (0x1), region = 82 }

// kernel: _residual_forward_impl.5
= control target key start
LH: loop header
LB: loop body
LE: loop exit
PB: predicated region body
PF: predicated region fallthrough
CT: control target
= control target key end

     0   :  { %s667_s21 = smov 0   ;;  %s713_s0 = inlined_call_operand.vmem [shape: bf16[128,128], index: 0, kind: input, shape index: {}]   ;;  %s714_s1 = inlined_call_operand.vmem [shape: bf16[128,4], index: 1, kind: input, shape index: {}]   ;;  %s715_s2 = inlined_call_operand.vmem [shape: bf16[4,128], index: 2, kind: input, shape index: {}]   ;;  %s716_s3 = inlined_call_operand.vmem [shape: f32[1,128], index: 3, kind: input, shape index: {}]   ;;  %s717_s4 = inlined_call_operand.vmem [shape: f32[1,128], index: 4, kind: input, shape index: {}]   ;;  %s718_s5 = inlined_call_operand.vmem [shape: f32[1,128], index: 5, kind: input, shape index: {}]   ;;  %s719_s6 = inlined_call_operand.vmem [shape: f32[128,128], index: 6, kind: output, shape index: {}]  }
   0x1 LB: > { %s550_s22 = sadd.s32 4294967295, %s630_s21   ;;  %p554_p0 = scmp.ge.s32.totalorder %s630_s21, 1  ;;  %s630_s21 = sphi %s667_s21, %s16_s21  }
   0x2   : > { %p224_p1 = scmp.lt.s32.totalorder %s630_s21, 3 }
   0x4   : > { %p225_p2 = pnand %p554_p0, %p224_p1 }
   0x5   : > { %v332_v0 = vld [vmem:[%s715_s2] sm:$0x3] (!%p225_p2)  ;;  %vm373_vm0 = vcmask (!%p225_p2), 1041408   ;;  %s555_s25 = sshll.u32 (!%p225_p2), %s550_s22, 3  ;;  %vm360_vm1 = vcmask (!%p225_p2), 31744  }
   0x6   : > { %228 = sbr.rel (%p225_p2) target bundleno = 244 (0xf4), region = 44  ;;  %610 = vmatprep.subr.msk.bf16.mxu0 (!%p225_p2), %vm373_vm0, %v332_v0  ;;  %611 = vmatprep.subr.msk.bf16.mxu1 (!%p225_p2), %vm373_vm0, %v332_v0  ;;  %v375_v1 = vsel (!%p225_p2), %vm373_vm0, %v332_v0, 0  ;;  %p260_p3 = scmp.lt.s32.totalorder (!%p225_p2), %s555_s25, 15  ;;  %v561_v11 = vld [vmem:[%s717_s4] ss:$0 sm:$0xff] (!%p225_p2) }
   0x7   : > { %599 = vmatpush3.bf16.msra.mxu0 (!%p225_p2), %v375_v1  ;;  %609 = vmatpush3.bf16.msra.mxu1 (!%p225_p2), %v375_v1  ;;  %v562_v20 = vld [vmem:[%s718_s5] ss:$0 sm:$0xff] (!%p225_p2) }
   0x8   : > { %v563_v25 = vld [vmem:[%s716_s3] ss:$0 sm:$0xff] (!%p225_p2) }
   0xd   : > { %s721_s25 = smov (!%p260_p3, %s555_s25), 15 }
   0xe   : > { %s556_s26 = sshll.u32 %s721_s25, 2  ;;  %s560_s15 = sshll.u32 %s721_s25, 3 }
   0xf   : > { %s269_s29 = scalar_lea.vmem %s714_s1, %s556_s26  ;;  %s263_s8 = scalar_lea.vmem %s713_s0, %s556_s26 }
  0x10   : > { %v620_v2 = vld [vmem:[%s269_s29] sm:$0xff]   ;;  %v621_v3 = vld [vmem:[%s269_s29 + $0x10] sm:$0xff]   ;;  %v622_v4 = vld [vmem:[%s269_s29 + $0x8] sm:$0xff]   ;;  %s700_s18 = scalar_lea.vmem %s719_s6, %s560_s15 }
  0x11   : > { %600 = vmatprep.mubr.msk.bf16.mxu0 %vm360_vm1, %v620_v2  ;;  %604 = vmatprep.mubr.msk.bf16.mxu1 %vm360_vm1, %v621_v3  ;;  %v623_v5 = vld [vmem:[%s269_s29 + $0x18] sm:$0xff]   ;;  %v590_v6 = vld [vmem:[%s263_s8 + $0x8] sm:$0xff]   ;;  %v575_v8 = vld [vmem:[%s263_s8] sm:$0xff]  }
  0x12   : > { %601 = vmatmul.mubr.msk.bf16.vlgmr.msra.gmra.mrb[0].mxu0 %vm360_vm1, %v622_v4  ;;  %605 = vmatmul.mubr.msk.bf16.vlgmr.msra.gmra.mrb[0].mxu1 %vm360_vm1, %v623_v5  ;;  %v592_v7 = vld [vmem:[%s263_s8 + $0x18] sm:$0xff]   ;;  %v591_v9 = vld [vmem:[%s263_s8 + $0x10] sm:$0xff]   ;;  %v580_v10 = vunpack.c.l.bf16 %v590_v6  ;;  %v576_v13 = vunpack.c.l.bf16 %v575_v8  ;;  %v581_v15 = vunpack.c.h.bf16 %v590_v6  ;;  %v577_v17 = vunpack.c.h.bf16 %v575_v8 }
  0x13   : > { %v588_v12 = vunpack.c.l.bf16 %v592_v7  ;;  %v584_v14 = vunpack.c.l.bf16 %v591_v9  ;;  %v589_v16 = vunpack.c.h.bf16 %v592_v7  ;;  %v585_v19 = vunpack.c.h.bf16 %v591_v9 }
  0x14   : > { %v303_v18 = vmul.f32 %v580_v10, %v561_v11  ;;  %v301_v22 = vmul.f32 %v576_v13, %v561_v11  ;;  %v304_v24 = vmul.f32 %v581_v15, %v561_v11  ;;  %v302_v27 = vmul.f32 %v577_v17, %v561_v11 }
  0x15   : > { %v307_v21 = vmul.f32 %v588_v12, %v561_v11  ;;  %v305_v23 = vmul.f32 %v584_v14, %v561_v11  ;;  %v308_v26 = vmul.f32 %v589_v16, %v561_v11  ;;  %v306_v29 = vmul.f32 %v585_v19, %v561_v11 }
  0x16   : > { %v318_v28 = vadd.f32 %v562_v20, %v303_v18  ;;  %v316_v32 = vadd.f32 %v562_v20, %v301_v22  ;;  %v319_v37 = vadd.f32 %v562_v20, %v304_v24  ;;  %v317_v43 = vadd.f32 %v562_v20, %v302_v27 }
  0x17   : > { %v322_v31 = vadd.f32 %v562_v20, %v307_v21  ;;  %v320_v36 = vadd.f32 %v562_v20, %v305_v23  ;;  %v323_v42 = vadd.f32 %v562_v20, %v308_v26  ;;  %v321_v49 = vadd.f32 %v562_v20, %v306_v29 }
  0xe5   : > { %v602_v30 = vpop.f32.mrb[0].mxu0  ;;  %v606_v34 = vpop.f32.mrb[0].mxu1 }
  0xe6   : > { %v420_v33 = vadd.f32 %v602_v30, %v563_v25  ;;  %v411_v35 = vpop.f32.mrb[1].mxu0  ;;  %v436_v38 = vadd.f32 %v606_v34, %v563_v25  ;;  %v427_v40 = vpop.f32.mrb[1].mxu1 }
  0xe7   : > { %v412_v39 = vadd.f32 %v563_v25, %v411_v35  ;;  %v603_v41 = vpop.f32.mrb[2].mxu0  ;;  %v428_v45 = vadd.f32 %v563_v25, %v427_v40  ;;  %v607_v47 = vpop.f32.mrb[2].mxu1 }
  0xe8   : > { %v444_v44 = vadd.f32 %v420_v33, %v318_v28  ;;  %v423_v46 = vadd.f32 %v603_v41, %v563_v25  ;;  %v414_v48 = vpop.f32.mrb[3].mxu0  ;;  %v448_v50 = vadd.f32 %v436_v38, %v322_v31  ;;  %v439_v52 = vadd.f32 %v607_v47, %v563_v25  ;;  %v430_v54 = vpop.f32.mrb[3].mxu1 }
  0xe9   : > { %v442_v51 = vadd.f32 %v412_v39, %v316_v32  ;;  %v415_v53 = vadd.f32 %v563_v25, %v414_v48  ;;  %v446_v56 = vadd.f32 %v428_v45, %v320_v36  ;;  %v431_v4 = vadd.f32 %v563_v25, %v430_v54 }
  0xea   : > { %vm452_vm2 = vcmp.ge.f32.partialorder %v444_v44, 0.0  ;;  %v460_v55 = vmul.f32 0.1, %v444_v44  ;;  %v445_v57 = vadd.f32 %v423_v46, %v319_v37  ;;  %vm456_vm3 = vcmp.ge.f32.partialorder %v448_v50, 0.0 }
  0xeb   : > { %v464_v58 = vmul.f32 0.1, %v448_v50  ;;  %vm450_vm4 = vcmp.ge.f32.partialorder %v442_v51, 0.0  ;;  %v458_v59 = vmul.f32 0.1, %v442_v51  ;;  %vm454_vm5 = vcmp.ge.f32.partialorder %v446_v56, 0.0 }
  0xec   : > { %v468_v60 = vsel %vm452_vm2, %v444_v44, %v460_v55  ;;  %v462_v61 = vmul.f32 0.1, %v446_v56  ;;  %vm453_vm6 = vcmp.ge.f32.partialorder %v445_v57, 0.0  ;;  %v461_v0 = vmul.f32 0.1, %v445_v57 }
  0xed   : > { %476 = vst [vmem:[%s700_s18 + $0x10] sm:$0xff] %v468_v60  ;;  %v472_v62 = vsel %vm456_vm3, %v448_v50, %v464_v58  ;;  %v466_v63 = vsel %vm450_vm4, %v442_v51, %v458_v59  ;;  %v449_v1 = vadd.f32 %v439_v52, %v323_v42  ;;  %v443_v3 = vadd.f32 %v415_v53, %v317_v43 }
  0xee   : > { %480 = vst [vmem:[%s700_s18 + $0x30] sm:$0xff] %v472_v62  ;;  %474 = vst [vmem:[%s700_s18] sm:$0xff] %v466_v63  ;;  %v470_v2 = vsel %vm454_vm5, %v446_v56, %v462_v61  ;;  %v469_v5 = vsel %vm453_vm6, %v445_v57, %v461_v0  ;;  %v447_v8 = vadd.f32 %v431_v4, %v321_v49 }
  0xef   : > { %478 = vst [vmem:[%s700_s18 + $0x20] sm:$0xff] %v470_v2  ;;  %vm457_vm7 = vcmp.ge.f32.partialorder %v449_v1, 0.0  ;;  %v465_v6 = vmul.f32 0.1, %v449_v1  ;;  %477 = vst [vmem:[%s700_s18 + $0x18] sm:$0xff] %v469_v5  ;;  %vm451_vm8 = vcmp.ge.f32.partialorder %v443_v3, 0.0 }
  0xf0   : > { %v459_v7 = vmul.f32 0.1, %v443_v3  ;;  %vm455_vm9 = vcmp.ge.f32.partialorder %v447_v8, 0.0  ;;  %v463_v11 = vmul.f32 0.1, %v447_v8 }
  0xf1   : > { %v473_v9 = vsel %vm457_vm7, %v449_v1, %v465_v6 }
  0xf2   : > { %481 = vst [vmem:[%s700_s18 + $0x38] sm:$0xff] %v473_v9  ;;  %v467_v10 = vsel %vm451_vm8, %v443_v3, %v459_v7  ;;  %v471_v12 = vsel %vm455_vm9, %v447_v8, %v463_v11 }
  0xf3   : > { %475 = vst [vmem:[%s700_s18 + $0x8] sm:$0xff] %v467_v10  ;;  %479 = vst [vmem:[%s700_s18 + $0x28] sm:$0xff] %v471_v12 }
  0xf4 PF: > { %s16_s21 = sadd.s32 1, %s630_s21  }
  0xf5   : > { %p13_p4 = scmp.ge.s32.totalorder %s16_s21, 4  }
  0xf7   :  { %15 = sbr.rel (!%p13_p4) target bundleno = 1 (0x1), region = 77 }

</bundles_post_ra>
